<compile_context>
chip_gen: v7x
topology: tpu7x:2x2x1
jax: 0.10.0
libtpu: 0.0.40
codegen_flags: <defaults>
</compile_context>

<pallas_src>
import jax
import jax.numpy as jnp
from jax.experimental import pallas as pl
from jax.experimental.pallas import tpu as pltpu

KSIZE = 3
STRIDE = 2
PAD = 1
C_IN = 4
C_OUT = 16
N_OUT = 2
FC_IN = 512           # hard-codes conv1 output flatten size (H=16, W=8 -> 16*8*4 = 512)


def dqn_kernel(patches_ref, wct_ref, wf_ref, bf_ref, out_ref):
    # patches_ref: (B*P, K+1)        im2col rows + trailing ones column (bias fold)
    # wct_ref:     (K+1, C_OUT)      conv1 weight^T with the conv bias appended as last row
    # wf_ref:      (N_OUT, P, C_OUT) fc2 weight as (out_unit, spatial, channel)
    # bf_ref:      (1, N_OUT)        fc2 bias
    # out_ref:     (B, N_OUT)
    conv = jnp.dot(patches_ref[...], wct_ref[...],
                   preferred_element_type=jnp.float32,
                   precision=jax.lax.Precision.HIGHEST)            # (B*P, C_OUT) on MXU
    conv = jnp.maximum(conv, 0.0)                                  # ReLU (bias already folded)

    batch, n_out = out_ref.shape
    p = wf_ref.shape[1]

    # fc2: out[b, o] = sum_{p, c} conv[b*P + p, c] * wf[o, p, c] + bf[o]
    # B and N_OUT are tiny static constants -> fully unrolled; each term is an
    # elementwise multiply of a free (P, C_OUT) sublane slice + XLU reductions.
    row = jax.lax.broadcasted_iota(jnp.int32, (batch, n_out), 0)   # hoisted out of the loops
    col = jax.lax.broadcasted_iota(jnp.int32, (batch, n_out), 1)
    acc = jnp.zeros((batch, n_out), jnp.float32)
    for o in range(n_out):                                         # N_OUT == 2, static
        w_o = wf_ref[o]                                            # (P, C_OUT), static index
        for b in range(batch):                                     # static
            prod = conv[b * p:(b + 1) * p, :] * w_o                # (P, C_OUT)
            s = jnp.sum(jnp.sum(prod, axis=-1, keepdims=True),     # lane reduce
                        axis=0, keepdims=True)                     # sublane reduce -> (1, 1)
            acc = acc + s * ((row == b) & (col == o)).astype(jnp.float32)
    out_ref[...] = acc + bf_ref[...]                               # single (B, N_OUT) store


def prepare_params(params):
    """One-time parameter repacking (NOT per-forward): keep this out of the jitted path."""
    wc, bc, wf, bf = params
    k = C_IN * KSIZE * KSIZE
    p = FC_IN // C_OUT                                             # 32 spatial positions
    wct = wc.reshape(C_OUT, k).T                                   # (K, C_OUT)
    wct_aug = jnp.concatenate([wct, bc.reshape(1, C_OUT)], axis=0)  # bias folded -> (K+1, C_OUT)
    # fc2 weight: (N_OUT, C_OUT*P) channel-major flatten -> (N_OUT, P, C_OUT); NOT tiled over batch.
    wf3 = wf.reshape(N_OUT, C_OUT, p).transpose(0, 2, 1)
    bf2 = bf.reshape(1, N_OUT)
    return wct_aug, wf3, bf2


def dqn_forward(x, packed):
    """Jitted forward: the only x-dependent glue is patch extraction."""
    wct_aug, wf3, bf2 = packed
    B = x.shape[0]
    n_out, p, c_out = wf3.shape

    # Patch extraction in torch's (I, kh, kw) feature order, output laid out NHWC so the
    # flatten to (B*P, K) is a plain reshape (no transpose HLO).
    patches = jax.lax.conv_general_dilated_patches(
        x, filter_shape=(KSIZE, KSIZE), window_strides=(STRIDE, STRIDE),
        padding=((PAD, PAD), (PAD, PAD)),
        dimension_numbers=("NCHW", "OIHW", "NHWC"))                # (B, Ho, Wo, C_IN*k*k)
    assert patches.shape[1] * patches.shape[2] == p, (patches.shape, p)   # FC_IN=512 contract
    k = patches.shape[-1]
    bp = B * p
    patches2 = patches.reshape(bp, k)
    # Trailing ones column, matched to the bias row appended to wct_aug.
    patches_aug = jnp.pad(patches2, ((0, 0), (0, 1)), constant_values=1.0)  # (B*P, K+1)

    flops = 2 * bp * (k + 1) * c_out + 2 * bp * c_out * n_out
    bytes_accessed = 4 * (patches_aug.size + wct_aug.size + wf3.size + bf2.size + B * n_out)

    vmem = pltpu.MemorySpace.VMEM
    return pl.pallas_call(
        dqn_kernel,
        out_shape=jax.ShapeDtypeStruct((B, n_out), jnp.float32),
        in_specs=[pl.BlockSpec(memory_space=vmem)] * 4,
        out_specs=pl.BlockSpec(memory_space=vmem),
        cost_estimate=pl.CostEstimate(flops=flops, transcendentals=0,
                                      bytes_accessed=bytes_accessed),
    )(patches_aug, wct_aug, wf3, bf2)


def init_params(key):
    """Deterministic init matching the module's __init__ recipe (synthetic, no checkpoint)."""
    k1, k2, k3 = jax.random.split(key, 3)
    # conv1: kaiming_normal_(mode='fan_out', nonlinearity='relu')
    fan_out = C_OUT * KSIZE * KSIZE
    wc = jax.random.normal(k1, (C_OUT, C_IN, KSIZE, KSIZE), jnp.float32) * jnp.sqrt(2.0 / fan_out)
    # conv1 bias: PyTorch default uniform(-1/sqrt(fan_in), 1/sqrt(fan_in))
    fan_in = C_IN * KSIZE * KSIZE
    bound = 1.0 / jnp.sqrt(float(fan_in))
    bc = jax.random.uniform(k2, (C_OUT,), jnp.float32, -bound, bound)
    # fc2: uniform_(-0.01, 0.01), bias = 0
    wf = jax.random.uniform(k3, (N_OUT, FC_IN), jnp.float32, -0.01, 0.01)
    bf = jnp.zeros((N_OUT,), jnp.float32)
    return wc, bc, wf, bf


def reference_forward(x, params):
    """Pure-JAX reference of the PyTorch forward (NCHW)."""
    wc, bc, wf, bf = params
    y = jax.lax.conv_general_dilated(
        x, wc, window_strides=(STRIDE, STRIDE),
        padding=((PAD, PAD), (PAD, PAD)),
        dimension_numbers=("NCHW", "OIHW", "NCHW"))
    y = jax.nn.relu(y + bc[None, :, None, None])
    y = y.reshape(y.shape[0], -1)
    return y @ wf.T + bf


if __name__ == "__main__":
    key = jax.random.PRNGKey(0)
    kx, kp = jax.random.split(key)
    # H=16, W=8 so conv1 output flattens to 16 * 8 * 4 = 512 = fc2.in_features.
    # (B*P = 64: headroom exists to batch up to B=4 on v5e / B=8 on v6e/v7x at no extra MXU cost.)
    x = jax.random.normal(kx, (2, C_IN, 16, 8), jnp.float32)
    params = init_params(kp)

    packed = prepare_params(params)            # one-time parameter repacking (outside jit)
    fwd = jax.jit(dqn_forward)
    out = jax.block_until_ready(fwd(x, packed))

    ref = reference_forward(x, params)
    assert out.shape == (2, N_OUT), out.shape
    assert jnp.allclose(out, ref, atol=1e-3, rtol=1e-3), (out, ref)
    print("KERNEL_OK")
</pallas_src>

<mosaic_0001>
module attributes {stable_mosaic.version = 11 : i64} {
  func.func @dqn_kernel(%arg0: memref<64x37xf32, #tpu.memory_space<vmem>>, %arg1: memref<37x16xf32, #tpu.memory_space<vmem>>, %arg2: memref<2x32x16xf32, #tpu.memory_space<vmem>>, %arg3: memref<1x2xf32, #tpu.memory_space<vmem>>, %arg4: memref<2x2xf32, #tpu.memory_space<vmem>>) attributes {dimension_semantics = [], scalar_prefetch = 0 : i64, scratch_operands = 0 : i64, tpu.core_type = #tpu.core_type<tc>} {
    %c0 = arith.constant 0 : index
    %c0_0 = arith.constant 0 : index
    %0 = vector.load %arg0[%c0, %c0_0] : memref<64x37xf32, #tpu.memory_space<vmem>>, vector<64x37xf32>
    %c0_1 = arith.constant 0 : index
    %c0_2 = arith.constant 0 : index
    %1 = vector.load %arg1[%c0_1, %c0_2] : memref<37x16xf32, #tpu.memory_space<vmem>>, vector<37x16xf32>
    %cst = arith.constant dense<0.000000e+00> : vector<64x16xf32>
    %2 = tpu.matmul %0, %1, %cst {dimension_numbers = #tpu.dot_dimension_numbers<[1], [0], [0], [1], [0, 0, 1, 1], [], []>, precision = #tpu.contract_precision<fp32>} : vector<64x37xf32>, vector<37x16xf32>, vector<64x16xf32> -> vector<64x16xf32>
    %cst_3 = arith.constant 0.000000e+00 : f32
    %3 = vector.broadcast %cst_3 : f32 to vector<64x16xf32>
    %4 = arith.maximumf %2, %3 : vector<64x16xf32>
    %5 = tpu.iota {dimensions = array<i32: 0>} : vector<2x2xi32>
    %6 = tpu.iota {dimensions = array<i32: 1>} : vector<2x2xi32>
    %cst_4 = arith.constant 0.000000e+00 : f32
    %7 = vector.broadcast %cst_4 : f32 to vector<2x2xf32>
    %c0_5 = arith.constant 0 : index
    %c0_6 = arith.constant 0 : index
    %c0_7 = arith.constant 0 : index
    %8 = vector.load %arg2[%c0_5, %c0_6, %c0_7] : memref<2x32x16xf32, #tpu.memory_space<vmem>>, vector<1x32x16xf32>
    %9 = vector.shape_cast %8 : vector<1x32x16xf32> to vector<32x16xf32>
    %10 = vector.extract_strided_slice %4 {offsets = [0, 0], sizes = [32, 16], strides = [1, 1]} : vector<64x16xf32> to vector<32x16xf32>
    %11 = arith.mulf %10, %9 : vector<32x16xf32>
    %cst_8 = arith.constant dense<0.000000e+00> : vector<32xf32>
    %12 = vector.multi_reduction <add>, %11, %cst_8 [1] : vector<32x16xf32> to vector<32xf32>
    %13 = vector.shape_cast %12 : vector<32xf32> to vector<32x1xf32>
    %cst_9 = arith.constant dense<0.000000e+00> : vector<1xf32>
    %14 = vector.multi_reduction <add>, %13, %cst_9 [0] : vector<32x1xf32> to vector<1xf32>
    %15 = vector.shape_cast %14 : vector<1xf32> to vector<1x1xf32>
    %c0_i32 = arith.constant 0 : i32
    %16 = vector.broadcast %c0_i32 : i32 to vector<2x2xi32>
    %17 = arith.cmpi eq, %5, %16 : vector<2x2xi32>
    %c0_i32_10 = arith.constant 0 : i32
    %18 = vector.broadcast %c0_i32_10 : i32 to vector<2x2xi32>
    %19 = arith.cmpi eq, %6, %18 : vector<2x2xi32>
    %20 = arith.andi %17, %19 : vector<2x2xi1>
    %21 = arith.extui %20 : vector<2x2xi1> to vector<2x2xi32>
    %22 = arith.sitofp %21 : vector<2x2xi32> to vector<2x2xf32>
    %23 = vector.broadcast %15 : vector<1x1xf32> to vector<2x2xf32>
    %24 = arith.mulf %23, %22 : vector<2x2xf32>
    %25 = arith.addf %7, %24 : vector<2x2xf32>
    %26 = vector.extract_strided_slice %4 {offsets = [32, 0], sizes = [32, 16], strides = [1, 1]} : vector<64x16xf32> to vector<32x16xf32>
    %27 = arith.mulf %26, %9 : vector<32x16xf32>
    %cst_11 = arith.constant dense<0.000000e+00> : vector<32xf32>
    %28 = vector.multi_reduction <add>, %27, %cst_11 [1] : vector<32x16xf32> to vector<32xf32>
    %29 = vector.shape_cast %28 : vector<32xf32> to vector<32x1xf32>
    %cst_12 = arith.constant dense<0.000000e+00> : vector<1xf32>
    %30 = vector.multi_reduction <add>, %29, %cst_12 [0] : vector<32x1xf32> to vector<1xf32>
    %31 = vector.shape_cast %30 : vector<1xf32> to vector<1x1xf32>
    %c1_i32 = arith.constant 1 : i32
    %32 = vector.broadcast %c1_i32 : i32 to vector<2x2xi32>
    %33 = arith.cmpi eq, %5, %32 : vector<2x2xi32>
    %c0_i32_13 = arith.constant 0 : i32
    %34 = vector.broadcast %c0_i32_13 : i32 to vector<2x2xi32>
    %35 = arith.cmpi eq, %6, %34 : vector<2x2xi32>
    %36 = arith.andi %33, %35 : vector<2x2xi1>
    %37 = arith.extui %36 : vector<2x2xi1> to vector<2x2xi32>
    %38 = arith.sitofp %37 : vector<2x2xi32> to vector<2x2xf32>
    %39 = vector.broadcast %31 : vector<1x1xf32> to vector<2x2xf32>
    %40 = arith.mulf %39, %38 : vector<2x2xf32>
    %41 = arith.addf %25, %40 : vector<2x2xf32>
    %c1 = arith.constant 1 : index
    %c0_14 = arith.constant 0 : index
    %c0_15 = arith.constant 0 : index
    %42 = vector.load %arg2[%c1, %c0_14, %c0_15] : memref<2x32x16xf32, #tpu.memory_space<vmem>>, vector<1x32x16xf32>
    %43 = vector.shape_cast %42 : vector<1x32x16xf32> to vector<32x16xf32>
    %44 = vector.extract_strided_slice %4 {offsets = [0, 0], sizes = [32, 16], strides = [1, 1]} : vector<64x16xf32> to vector<32x16xf32>
    %45 = arith.mulf %44, %43 : vector<32x16xf32>
    %cst_16 = arith.constant dense<0.000000e+00> : vector<32xf32>
    %46 = vector.multi_reduction <add>, %45, %cst_16 [1] : vector<32x16xf32> to vector<32xf32>
    %47 = vector.shape_cast %46 : vector<32xf32> to vector<32x1xf32>
    %cst_17 = arith.constant dense<0.000000e+00> : vector<1xf32>
    %48 = vector.multi_reduction <add>, %47, %cst_17 [0] : vector<32x1xf32> to vector<1xf32>
    %49 = vector.shape_cast %48 : vector<1xf32> to vector<1x1xf32>
    %c0_i32_18 = arith.constant 0 : i32
    %50 = vector.broadcast %c0_i32_18 : i32 to vector<2x2xi32>
    %51 = arith.cmpi eq, %5, %50 : vector<2x2xi32>
    %c1_i32_19 = arith.constant 1 : i32
    %52 = vector.broadcast %c1_i32_19 : i32 to vector<2x2xi32>
    %53 = arith.cmpi eq, %6, %52 : vector<2x2xi32>
    %54 = arith.andi %51, %53 : vector<2x2xi1>
    %55 = arith.extui %54 : vector<2x2xi1> to vector<2x2xi32>
    %56 = arith.sitofp %55 : vector<2x2xi32> to vector<2x2xf32>
    %57 = vector.broadcast %49 : vector<1x1xf32> to vector<2x2xf32>
    %58 = arith.mulf %57, %56 : vector<2x2xf32>
    %59 = arith.addf %41, %58 : vector<2x2xf32>
    %60 = vector.extract_strided_slice %4 {offsets = [32, 0], sizes = [32, 16], strides = [1, 1]} : vector<64x16xf32> to vector<32x16xf32>
    %61 = arith.mulf %60, %43 : vector<32x16xf32>
    %cst_20 = arith.constant dense<0.000000e+00> : vector<32xf32>
    %62 = vector.multi_reduction <add>, %61, %cst_20 [1] : vector<32x16xf32> to vector<32xf32>
    %63 = vector.shape_cast %62 : vector<32xf32> to vector<32x1xf32>
    %cst_21 = arith.constant dense<0.000000e+00> : vector<1xf32>
    %64 = vector.multi_reduction <add>, %63, %cst_21 [0] : vector<32x1xf32> to vector<1xf32>
    %65 = vector.shape_cast %64 : vector<1xf32> to vector<1x1xf32>
    %c1_i32_22 = arith.constant 1 : i32
    %66 = vector.broadcast %c1_i32_22 : i32 to vector<2x2xi32>
    %67 = arith.cmpi eq, %5, %66 : vector<2x2xi32>
    %c1_i32_23 = arith.constant 1 : i32
    %68 = vector.broadcast %c1_i32_23 : i32 to vector<2x2xi32>
    %69 = arith.cmpi eq, %6, %68 : vector<2x2xi32>
    %70 = arith.andi %67, %69 : vector<2x2xi1>
    %71 = arith.extui %70 : vector<2x2xi1> to vector<2x2xi32>
    %72 = arith.sitofp %71 : vector<2x2xi32> to vector<2x2xf32>
    %73 = vector.broadcast %65 : vector<1x1xf32> to vector<2x2xf32>
    %74 = arith.mulf %73, %72 : vector<2x2xf32>
    %75 = arith.addf %59, %74 : vector<2x2xf32>
    %c0_24 = arith.constant 0 : index
    %c0_25 = arith.constant 0 : index
    %76 = vector.load %arg3[%c0_24, %c0_25] : memref<1x2xf32, #tpu.memory_space<vmem>>, vector<1x2xf32>
    %77 = vector.broadcast %76 : vector<1x2xf32> to vector<2x2xf32>
    %78 = arith.addf %75, %77 : vector<2x2xf32>
    %c0_26 = arith.constant 0 : index
    %c0_27 = arith.constant 0 : index
    %79 = vector.load %arg4[%c0_26, %c0_27] : memref<2x2xf32, #tpu.memory_space<vmem>>, vector<2x2xf32>
    tpu.vector_store %arg4[%c0_26, %c0_27], %78 {strides = array<i32>} : memref<2x2xf32, #tpu.memory_space<vmem>>, vector<2x2xf32>,
    return
  }
}

</mosaic_0001>

<bundles_post_ra>
// kernel: dqn_forward.1
= control target key start
LH: loop header
LB: loop body
LE: loop exit
PB: predicated region body
PF: predicated region fallthrough
CT: control target
= control target key end

     0   :  { %vm56_vm0 = vcmask 1044480   ;;  %vm31_vm1 = vcmask 302080   ;;  %s1647_s0 = inlined_call_operand.vmem [shape: f32[64,37], index: 0, kind: input, shape index: {}]   ;;  %s1648_s1 = inlined_call_operand.vmem [shape: f32[37,16], index: 1, kind: input, shape index: {}]   ;;  %s1649_s2 = inlined_call_operand.vmem [shape: f32[2,32,16], index: 2, kind: input, shape index: {}]   ;;  %s1650_s3 = inlined_call_operand.vmem [shape: f32[1,2], index: 3, kind: input, shape index: {}]   ;;  %s1651_s4 = inlined_call_operand.hbm [shape: f32[2,2], index: 4, kind: output, shape index: {}]  }
   0x1   :  { %v26_v0 = vld [vmem:[%s1648_s1] sm:$0xff]  ;;  %v27_v1 = vld [vmem:[%s1648_s1 + $0x8] sm:$0xff]  ;;  %v28_v2 = vld [vmem:[%s1648_s1 + $0x10] sm:$0xff] }
   0x2   :  { %v61_v3 = vand.u32 4294901760, %v26_v0  ;;  %v64_v4 = vand.u32 4294901760, %v27_v1  ;;  %v29_v5 = vld [vmem:[%s1648_s1 + $0x18] sm:$0xff]  ;;  %v67_v6 = vand.u32 4294901760, %v28_v2  ;;  %v30_v7 = vld [vmem:[%s1648_s1 + $0x20] sm:$0x1f] }
   0x3   :  { %v70_v8 = vand.u32 4294901760, %v29_v5  ;;  %v1404_v9 = vsel %vm56_vm0, %v30_v7, 0  ;;  %v18_v10 = vld [vmem:[%s1647_s0] sm:$0xff]  ;;  %v19_v11 = vld [vmem:[%s1647_s0 + $0x8] sm:$0xff]  ;;  %v20_v12 = vld [vmem:[%s1647_s0 + $0x10] sm:$0xff] }
   0x4   :  { %v1415_v13 = vpack.c.bf16 %v64_v4, %v61_v3  ;;  %v1418_v14 = vand.u32 4294901760, %v1404_v9  ;;  %v33_v15 = vsel %vm31_vm1, %v18_v10, 0  ;;  %v36_v16 = vsel %vm31_vm1, %v19_v11, 0  ;;  %v21_v17 = vld [vmem:[%s1647_s0 + $0x18] sm:$0xff] }
   0x5   :  { %v1425_v18 = vpack.c.bf16 %v70_v8, %v67_v6  ;;  %v1427_v19 = vand.u32 4294901760, %v33_v15  ;;  %v1429_v20 = vand.u32 4294901760, %v36_v16  ;;  %v1431_v21 = vsub.f32 %v26_v0, %v61_v3 }
   0x6   :  { %9 = vsyncpa [#allocation3], 0  ;;  %1249 = vmatprep.subr.bf16.mxu1 %v1415_v13  ;;  %1273 = vmatprep.subr.bf16.mxu0 %v1415_v13  ;;  %v1435_v22 = vsub.f32 %v27_v1, %v64_v4  ;;  %v39_v23 = vsel %vm31_vm1, %v20_v12, 0  ;;  %v42_v24 = vsel %vm31_vm1, %v21_v17, 0  ;;  %v1439_v25 = vsub.f32 %v28_v2, %v67_v6  ;;  %v22_v41 = vld [vmem:[%s1647_s0 + $0x20] sm:$0xff]  ;;  %v23_v50 = vld [vmem:[%s1647_s0 + $0x28] sm:$0xff] }
   0x7   :  { %1251 = vmatpush3.bf16.msra.mxu1 %v1415_v13  ;;  %1275 = vmatpush3.bf16.msra.mxu0 %v1415_v13  ;;  %v1444_v26 = vsub.f32 %v33_v15, %v1427_v19  ;;  %v1447_v27 = vsub.f32 %v36_v16, %v1429_v20  ;;  %v213_v28 = vand.u32 4294901760, %v1431_v21  ;;  %v1450_v29 = vand.u32 4294901760, %v39_v23  ;;  %v24_v51 = vld [vmem:[%s1647_s0 + $0x30] sm:$0xff]  ;;  %v25_v60 = vld [vmem:[%s1647_s0 + $0x38] sm:$0xff]  ;;  %s1363_s30 = smov [#allocation2]  }
   0x8   :  { %1253 = vmatprep.subr.bf16.mxu1 %v1425_v18  ;;  %1277 = vmatprep.subr.bf16.mxu0 %v1425_v18  ;;  %v220_v30 = vand.u32 4294901760, %v1435_v22  ;;  %v1455_v31 = vand.u32 4294901760, %v42_v24  ;;  %v227_v32 = vand.u32 4294901760, %v1439_v25  ;;  %v1458_v33 = vsub.f32 %v29_v5, %v70_v8  ;;  %s1021_s1 = sshll.u32 %s1363_s30, 4  ;;  %s1022_s1 = int_to_ptr.vmem [resolvable:$true] %s1021_s1 }
   0x9   :  { %v132_v34 = vand.u32 4294901760, %v1444_v26  ;;  %v142_v35 = vand.u32 4294901760, %v1447_v27  ;;  %v214_v36 = vsub.f32 %v1431_v21, %v213_v28  ;;  %v1464_v37 = vsub.f32 %v39_v23, %v1450_v29  ;;  %s1338_s5 = scalar_lea.vmem %s1022_s1, 32  ;;  %p1343_p1 = scmp.lt.s32.totalorder %s1022_s1, %s1022_s1 }
   0xa   :  { %v221_v38 = vsub.f32 %v1435_v22, %v220_v30  ;;  %v1468_v39 = vsub.f32 %v42_v24, %v1455_v31  ;;  %v228_v40 = vsub.f32 %v1439_v25, %v227_v32  ;;  %v1280_v47 = vpack.c.bf16 %v220_v30, %v213_v28  ;;  %p1339_p0 = scmp.ne.s32.totalorder %s1022_s1, %s1338_s5  ;;  %p1344_p2 = scmp.lt.s32.totalorder %s1338_s5, %s1338_s5 }
   0xb   :  { %1255 = vmatpush3.bf16.msra.mxu1 %v1425_v18  ;;  %1279 = vmatpush3.bf16.msra.mxu0 %v1425_v18  ;;  %v133_v42 = vsub.f32 %v1444_v26, %v132_v34  ;;  %v143_v43 = vsub.f32 %v1447_v27, %v142_v35  ;;  %v215_v44 = vand.u32 4294901760, %v214_v36  ;;  %v152_v45 = vand.u32 4294901760, %v1464_v37 }
   0xc   :  { %1124 = vmatprep.subr.mxu1 %v1418_v14  ;;  %1190 = vmatprep.subr.mxu0 %v1418_v14  ;;  %v222_v46 = vand.u32 4294901760, %v221_v38  ;;  %v162_v48 = vand.u32 4294901760, %v1468_v39  ;;  %v234_v49 = vand.u32 4294901760, %v1458_v33  ;;  %v45_v55 = vsel %vm31_vm1, %v22_v41, 0  ;;  %p1345_p3 = por %p1344_p2, %p1343_p1 }
   0xd   :  { %v134_v52 = vand.u32 4294901760, %v133_v42  ;;  %1192 = vmatprep.mubr.f32.mxu0 %v132_v34  ;;  %v144_v53 = vand.u32 4294901760, %v143_v43  ;;  %v153_v54 = vsub.f32 %v1464_v37, %v152_v45  ;;  %v229_v58 = vand.u32 4294901760, %v228_v40 }
   0xe   :  { %v1256_v56 = vpack.c.bf16 %v222_v46, %v215_v44  ;;  %v163_v57 = vsub.f32 %v1468_v39, %v162_v48  ;;  %v235_v59 = vsub.f32 %v1458_v33, %v234_v49  ;;  %v1497_v62 = vand.u32 4294901760, %v45_v55  ;;  %p1346_p4 = pnand %p1345_p3, %p1339_p0 }
   0xf   :  { %1125 = vmatpush3.msra.mxu1 %v1418_v14  ;;  %1126 = vmatprep.mubr.f32.mxu1 %v134_v52  ;;  %v154_v61 = vand.u32 4294901760, %v153_v54  ;;  %v48_v63 = vsel %vm31_vm1, %v23_v50, 0  ;;  %v51_v0 = vsel %vm31_vm1, %v24_v51, 0  ;;  %v1284_v5 = vpack.c.bf16 %v234_v49, %v227_v32 }
  0x10   :  { %1191 = vmatpush3.msra.mxu0 %v1418_v14  ;;  %1127 = vmatmul.mubr.f32.vlgmr.msra.gmra.mrb[0].mxu1 %v144_v53  ;;  %v164_v1 = vand.u32 4294901760, %v163_v57  ;;  %v236_v2 = vand.u32 4294901760, %v235_v59  ;;  %v1502_v3 = vand.u32 4294901760, %v48_v63  ;;  %v1504_v4 = vand.u32 4294901760, %v51_v0 }
  0x11   :  { %1257 = vmatprep.subr.bf16.mxu1 %v1256_v56  ;;  %1193 = vmatmul.mubr.f32.vlgmr.msra.gmra.mrb[0].mxu0 %v142_v35  ;;  %v1507_v6 = vsub.f32 %v45_v55, %v1497_v62  ;;  %v1511_v7 = vsub.f32 %v1404_v9, %v1418_v14  ;;  %v54_v8 = vsel %vm31_vm1, %v25_v60, 0  ;;  %v1264_v43 = vpack.c.bf16 %v1435_v22, %v1431_v21  ;;  %v1582_v22 = vld [vmem:[%s1649_s2 + $0x28] sm:$0xff] }
  0x12   :  { %1281 = vmatprep.subr.bf16.mxu0 %v1280_v47  ;;  %1259 = vmatpush3.bf16.msra.mxu1 %v1256_v56  ;;  %v1260_v10 = vpack.c.bf16 %v236_v2, %v229_v58  ;;  %v1515_v11 = vsub.f32 %v48_v63, %v1502_v3  ;;  %v1518_v12 = vsub.f32 %v51_v0, %v1504_v4  ;;  %v1520_v15 = vand.u32 4294901760, %v54_v8  ;;  %v1031_v56 = vld [vmem:[%s1649_s2 + $0x20] sm:$0xff] }
  0x13   :  { %1283 = vmatpush3.bf16.msra.mxu0 %v1280_v47  ;;  %1129 = vmatprep.mubr.f32.mxu1 %v154_v61  ;;  %v172_v16 = vand.u32 4294901760, %v1507_v6  ;;  %v241_v9 = vand.u32 4294901760, %v1511_v7  ;;  %vm879_vm2 = vcmask 130048   ;;  %vm1013_vm11 = vcmask 9216  }
  0x14   :  { %1195 = vmatprep.mubr.f32.mxu0 %v152_v45  ;;  %1130 = vmatmul.mubr.f32.gmra.mrb[2].mxu1 %v164_v1  ;;  %v182_v17 = vand.u32 4294901760, %v1515_v11  ;;  %v192_v23 = vand.u32 4294901760, %v1518_v12  ;;  %v1527_v24 = vsub.f32 %v54_v8, %v1520_v15  ;;  %v1268_v45 = vpack.c.bf16 %v1458_v33, %v1439_v25  ;;  %v872_v25 = vld [vmem:[%s1649_s2 + $0x8] sm:$0xff] }
  0x15   :  { %1196 = vmatmul.mubr.f32.gmra.mrb[2].mxu0 %v162_v48  ;;  %1261 = vmatprep.subr.bf16.mxu1 %v1260_v10  ;;  %v173_v28 = vsub.f32 %v1507_v6, %v172_v16  ;;  %v242_v30 = vsub.f32 %v1511_v7, %v241_v9 }
  0x16   :  { %1285 = vmatprep.subr.bf16.mxu0 %v1284_v5  ;;  %1263 = vmatpush3.bf16.msra.mxu1 %v1260_v10  ;;  %v183_v32 = vsub.f32 %v1515_v11, %v182_v17  ;;  %v193_v34 = vsub.f32 %v1518_v12, %v192_v23  ;;  %v202_v35 = vand.u32 4294901760, %v1527_v24 }
  0x17   :  { %v174_v36 = vand.u32 4294901760, %v173_v28  ;;  %1198 = vmatprep.mubr.f32.mxu0 %v172_v16  ;;  %1287 = vmatpush3.bf16.msra.mxu0 %v1284_v5  ;;  %v243_v38 = vand.u32 4294901760, %v242_v30 }
  0x18   :  { %v184_v40 = vand.u32 4294901760, %v183_v32  ;;  %v194_v41 = vand.u32 4294901760, %v193_v34  ;;  %1212 = vmatprep.subr.mxu0 %v241_v9  ;;  %v203_v42 = vsub.f32 %v1527_v24, %v202_v35  ;;  %v1033_v32 = vld [vmem:[%s1649_s2 + $0x30] sm:$0xff] }
  0x19   :  { %1132 = vmatprep.mubr.f32.mxu1 %v174_v36  ;;  %1199 = vmatmul.mubr.f32.gmra.mrb[4].mxu0 %v182_v17 }
  0x1a   :  { %1133 = vmatmul.mubr.f32.gmra.mrb[4].mxu1 %v184_v40  ;;  %1146 = vmatprep.subr.mxu1 %v243_v38  ;;  %v204_v44 = vand.u32 4294901760, %v203_v42 }
  0x1b   :  { %1135 = vmatprep.mubr.f32.mxu1 %v194_v41  ;;  %1201 = vmatprep.mubr.f32.mxu0 %v192_v23 }
  0x1c   :  { %1147 = vmatpush3.msra.mxu1 %v243_v38  ;;  %1213 = vmatpush3.msra.mxu0 %v241_v9  ;;  %v873_v9 = vld [vmem:[%s1649_s2 + $0x10] sm:$0xff] }
  0x1d   :  { %1202 = vmatmul.mubr.f32.gmra.mrb[6].mxu0 %v202_v35  ;;  %1265 = vmatprep.subr.bf16.mxu1 %v1264_v43 }
  0x1e   :  { %1136 = vmatmul.mubr.f32.gmra.mrb[6].mxu1 %v204_v44  ;;  %1214 = vmatprep.mubr.f32.mxu0 %v1427_v19 }
  0x1f   :  { %1148 = vmatprep.mubr.f32.mxu1 %v1427_v19  ;;  %1289 = vmatprep.subr.bf16.mxu0 %v1415_v13 }
  0x21   :  { %1215 = vmatmul.mubr.f32.vlgmr.msra.gmra.mrb[0].mxu0 %v1429_v20 }
  0x22   :  { %1149 = vmatmul.mubr.f32.vlgmr.msra.gmra.mrb[0].mxu1 %v1429_v20  ;;  %1291 = vmatpush3.bf16.msra.mxu0 %v1415_v13 }
  0x23   :  { %1267 = vmatpush3.bf16.msra.mxu1 %v1264_v43  ;;  %1151 = vmatprep.mubr.f32.mxu1 %v1450_v29 }
  0x24   :  { %1217 = vmatprep.mubr.f32.mxu0 %v1450_v29  ;;  %1269 = vmatprep.subr.bf16.mxu1 %v1268_v45 }
  0x25   :  { %1218 = vmatmul.mubr.f32.gmra.mrb[2].mxu0 %v1455_v31  ;;  %1293 = vmatprep.subr.bf16.mxu0 %v1425_v18 }
  0x26   :  { %1152 = vmatmul.mubr.f32.gmra.mrb[2].mxu1 %v1455_v31  ;;  %1220 = vmatprep.mubr.f32.mxu0 %v1497_v62 }
  0x27   :  { %1154 = vmatprep.mubr.f32.mxu1 %v1497_v62  ;;  %1271 = vmatpush3.bf16.msra.mxu1 %v1268_v45  ;;  %v1034_v45 = vld [vmem:[%s1649_s2 + $0x38] sm:$0xff] }
  0x28   :  { %1295 = vmatpush3.bf16.msra.mxu0 %v1425_v18  ;;  %1168 = vmatprep.subr.mxu1 %v1511_v7 }
  0x29   :  { %1221 = vmatmul.mubr.f32.gmra.mrb[4].mxu0 %v1502_v3  ;;  %1234 = vmatprep.subr.mxu0 %v1418_v14 }
  0x2a   :  { %1155 = vmatmul.mubr.f32.gmra.mrb[4].mxu1 %v1502_v3  ;;  %1223 = vmatprep.mubr.f32.mxu0 %v1504_v4 }
  0x2b   :  { %1157 = vmatprep.mubr.f32.mxu1 %v1504_v4  ;;  %1169 = vmatpush3.msra.mxu1 %v1511_v7 }
  0x2c   :  { %1235 = vmatpush3.msra.mxu0 %v1418_v14 }
  0x2d   :  { %1224 = vmatmul.mubr.f32.gmra.mrb[6].mxu0 %v1520_v15 }
  0x2e   :  { %1158 = vmatmul.mubr.f32.gmra.mrb[6].mxu1 %v1520_v15  ;;  %1236 = vmatprep.mubr.f32.mxu0 %v1427_v19 }
  0x2f   :  { %1170 = vmatprep.mubr.f32.mxu1 %v1444_v26 }
  0x31   :  { %1237 = vmatmul.mubr.f32.vlgmr.msra.gmra.mrb[0].mxu0 %v1429_v20 }
  0x32   :  { %1171 = vmatmul.mubr.f32.vlgmr.msra.gmra.mrb[0].mxu1 %v1447_v27  ;;  %1239 = vmatprep.mubr.f32.mxu0 %v1450_v29 }
  0x33   :  { %1173 = vmatprep.mubr.f32.mxu1 %v1464_v37  ;;  %v871_v37 = vld [vmem:[%s1649_s2] sm:$0xff] }
  0x35   :  { %1240 = vmatmul.mubr.f32.gmra.mrb[2].mxu0 %v1455_v31 }
  0x36   :  { %1174 = vmatmul.mubr.f32.gmra.mrb[2].mxu1 %v1468_v39  ;;  %1242 = vmatprep.mubr.f32.mxu0 %v1497_v62 }
  0x37   :  { %1176 = vmatprep.mubr.f32.mxu1 %v1507_v6 }
  0x39   :  { %1243 = vmatmul.mubr.f32.gmra.mrb[4].mxu0 %v1502_v3 }
  0x3a   :  { %1177 = vmatmul.mubr.f32.gmra.mrb[4].mxu1 %v1515_v11  ;;  %1245 = vmatprep.mubr.f32.mxu0 %v1504_v4  ;;  %v874_v4 = vld [vmem:[%s1649_s2 + $0x18] sm:$0xff] }
  0x3b   :  { %1179 = vmatprep.mubr.f32.mxu1 %v1518_v12 }
  0x3d   :  { %1246 = vmatmul.mubr.f32.gmra.mrb[6].mxu0 %v1520_v15 }
  0x3e   :  { %1180 = vmatmul.mubr.f32.gmra.mrb[6].mxu1 %v1527_v24 }
 0x104   :  { %v1238_v13 = vpop.f32.mrb[0].mxu0 }
 0x105   :  { %v1172_v14 = vpop.f32.mrb[0].mxu1  ;;  %v813_v18 = vpop.f32.mrb[1].mxu0 }
 0x106   :  { %v1296_v19 = vadd.f32 %v1238_v13, %v1172_v14  ;;  %v426_v20 = vpop.f32.mrb[1].mxu1 }
 0x107   :  { %v1297_v21 = vadd.f32 %v813_v18, %v426_v20 }
 0x108   :  { %v860_v26 = vmax.f32 %v1296_v19, 0.0  ;;  %v1241_v27 = vpop.f32.mrb[2].mxu0 }
 0x109   :  { %v859_v29 = vmax.f32 %v1297_v21, 0.0  ;;  %v1175_v31 = vpop.f32.mrb[2].mxu1  ;;  %v825_v33 = vpop.f32.mrb[3].mxu0 }
 0x10a   :  { %v1590_v39 = vadd.f32 %v1241_v27, %v1175_v31  ;;  %v440_v46 = vpop.f32.mrb[3].mxu1  ;;  %v945_v47 = vmul.f32 %v1582_v22, %v860_v26  ;;  %v876_v48 = vmul.f32 %v872_v25, %v860_v26 }
 0x10b   :  { %v1299_v49 = vadd.f32 %v825_v33, %v440_v46  ;;  %v875_v53 = vmul.f32 %v871_v37, %v859_v29  ;;  %v944_v0 = vmul.f32 %v1031_v56, %v859_v29 }
 0x10c   :  { %v1244_v50 = vpop.f32.mrb[4].mxu0  ;;  %v951_v51 = vsel %vm879_vm2, %v945_v47, 0.0  ;;  %v883_v52 = vsel %vm879_vm2, %v876_v48, 0.0  ;;  %v862_v60 = vmax.f32 %v1590_v39, 0.0 }
 0x10d   :  { %952 = vadd.xlane.f32.xlu1 %v951_v51  ;;  %884 = vadd.xlane.f32.xlu0 %v883_v52  ;;  %v1178_v54 = vpop.f32.mrb[4].mxu1  ;;  %v837_v55 = vpop.f32.mrb[5].mxu0  ;;  %v880_v63 = vsel %vm879_vm2, %v875_v53, 0.0  ;;  %v861_v8 = vmax.f32 %v1299_v49, 0.0  ;;  %v948_v11 = vsel %vm879_vm2, %v944_v0, 0.0 }
 0x10e   :  { %v1300_v57 = vadd.f32 %v1244_v50, %v1178_v54  ;;  %v454_v58 = vpop.f32.mrb[5].mxu1  ;;  %v878_v15 = vmul.f32 %v874_v4, %v862_v60  ;;  %v947_v19 = vmul.f32 %v1034_v45, %v862_v60  ;;  %v867_v54 = vlaneseq }
 0x10f   :  { %v1301_v59 = vadd.f32 %v837_v55, %v454_v58  ;;  %v877_v17 = vmul.f32 %v873_v9, %v861_v8  ;;  %v946_v34 = vmul.f32 %v1033_v32, %v861_v8 }
 0x110   :  { %v864_v61 = vmax.f32 %v1300_v57, 0.0  ;;  %v1247_v62 = vpop.f32.mrb[6].mxu0  ;;  %v889_v24 = vsel %vm879_vm2, %v878_v15, 0.0  ;;  %v957_v21 = vsel %vm879_vm2, %v947_v19, 0.0 }
 0x111   :  { %v863_v1 = vmax.f32 %v1301_v59, 0.0  ;;  %881 = vadd.xlane.f32.xlu0 %v880_v63  ;;  %v1181_v2 = vpop.f32.mrb[6].mxu1  ;;  %v849_v3 = vpop.f32.mrb[7].mxu0  ;;  %v886_v36 = vsel %vm879_vm2, %v877_v17, 0.0  ;;  %v954_v41 = vsel %vm879_vm2, %v946_v34, 0.0  ;;  %v870_v63 = vand.u32 127, %v867_v54 }
 0x112   :  { %v1302_v5 = vadd.f32 %v1247_v62, %v1181_v2  ;;  %v468_v6 = vpop.f32.mrb[7].mxu1  ;;  %v909_v7 = vmul.f32 %v872_v25, %v864_v61  ;;  %v976_v43 = vmul.f32 %v1582_v22, %v864_v61  ;;  %v868_v62 = vshrl.u32 %v867_v54, 7 }
 0x113   :  { %v1303_v10 = vadd.f32 %v849_v3, %v468_v6  ;;  %v908_v16 = vmul.f32 %v871_v37, %v863_v1  ;;  %v975_v30 = vmul.f32 %v1031_v56, %v863_v1  ;;  %vm902_vm4 = vcmp.eq.s32.totalorder %v870_v63, 0 }
 0x114   :  { %v915_v12 = vsel %vm879_vm2, %v909_v7, 0.0  ;;  %v866_v23 = vmax.f32 %v1302_v5, 0.0  ;;  %v982_v13 = vsel %vm879_vm2, %v976_v43, 0.0  ;;  %vm901_vm3 = vcmp.eq.s32.totalorder %v868_v62, 0 }
 0x115   :  { %949 = vadd.xlane.f32.xlu0 %v948_v11  ;;  %916 = vadd.xlane.f32.xlu1 %v915_v12  ;;  %v912_v28 = vsel %vm879_vm2, %v908_v16, 0.0  ;;  %v865_v35 = vmax.f32 %v1303_v10, 0.0  ;;  %v979_v38 = vsel %vm879_vm2, %v975_v30, 0.0  ;;  %vm933_vm5 = vcmp.eq.s32.totalorder %v868_v62, 1  ;;  %vm903_vm6 = vmand %vm901_vm3, %vm902_vm4 }
 0x116   :  { %v911_v40 = vmul.f32 %v874_v4, %v866_v23  ;;  %v978_v22 = vmul.f32 %v1034_v45, %v866_v23  ;;  %vm969_vm7 = vcmp.eq.s32.totalorder %v870_v63, 1  ;;  %vm934_vm8 = vmand %vm933_vm5, %vm902_vm4 }
 0x117   :  { %v910_v44 = vmul.f32 %v873_v9, %v865_v35  ;;  %v977_v18 = vmul.f32 %v1033_v32, %v865_v35  ;;  %vm970_vm9 = vmand %vm901_vm3, %vm969_vm7 }
 0x118   :  { %v921_v42 = vsel %vm879_vm2, %v911_v40, 0.0  ;;  %v988_v25 = vsel %vm879_vm2, %v978_v22, 0.0  ;;  %vm1000_vm10 = vmand %vm933_vm5, %vm969_vm7 }
 0x119   :  { %890 = vadd.xlane.f32.xlu0 %v889_v24  ;;  %913 = vadd.xlane.f32.xlu1 %v912_v28  ;;  %v918_v14 = vsel %vm879_vm2, %v910_v44, 0.0  ;;  %v985_v20 = vsel %vm879_vm2, %v977_v18, 0.0 }
 0x11d   :  { %887 = vadd.xlane.f32.xlu0 %v886_v36  ;;  %980 = vadd.xlane.f32.xlu1 %v979_v38  ;;  %v1362_v36 = vmov 0.0  }
 0x11e   :  { %v1029_v38 = vsel %vm903_vm6, 1.0, %v1362_v36  ;;  %v1030_v40 = vsel %vm934_vm8, 1.0, %v1362_v36  ;;  %v1035_v44 = vsel %vm970_vm9, 1.0, %v1362_v36  ;;  %v1036_v22 = vsel %vm1000_vm10, 1.0, %v1362_v36 }
 0x121   :  { %955 = vadd.xlane.f32.xlu0 %v954_v41  ;;  %922 = vadd.xlane.f32.xlu1 %v921_v42 }
 0x125   :  { %983 = vadd.xlane.f32.xlu0 %v982_v13  ;;  %919 = vadd.xlane.f32.xlu1 %v918_v14 }
 0x129   :  { %986 = vadd.xlane.f32.xlu0 %v985_v20  ;;  %958 = vadd.xlane.f32.xlu1 %v957_v21 }
 0x12d   :  { %989 = vadd.xlane.f32.xlu1 %v988_v25 }
 0x19a   :  { %v885_v26 = vpop.xlane.xlu0 %884  ;;  %v953_v27 = vpop.xlane.xlu1 %952 }
 0x19e   :  { %v882_v29 = vpop.xlane.xlu0 %881 }
 0x19f   :  { %v892_v46 = vadd.f32 %v885_v26, %v882_v29  ;;  %v1037_v29 = vld [vmem:[%s1650_s3] ss:$0 sm:$0xff] }
 0x1a2   :  { %v950_v31 = vpop.xlane.xlu0 %949  ;;  %v917_v33 = vpop.xlane.xlu1 %916 }
 0x1a3   :  { %v960_v59 = vadd.f32 %v953_v27, %v950_v31 }
 0x1a6   :  { %v891_v37 = vpop.xlane.xlu0 %890  ;;  %v914_v39 = vpop.xlane.xlu1 %913 }
 0x1a7   :  { %v924_v55 = vadd.f32 %v917_v33, %v914_v39 }
 0x1aa   :  { %v888_v47 = vpop.xlane.xlu0 %887  ;;  %v981_v48 = vpop.xlane.xlu1 %980 }
 0x1ab   :  { %v893_v49 = vadd.f32 %v892_v46, %v888_v47 }
 0x1ad   :  { %v894_v50 = vadd.f32 %v893_v49, %v891_v37 }
 0x1ae   :  { %v956_v51 = vpop.xlane.xlu0 %955  ;;  %v923_v52 = vpop.xlane.xlu1 %922 }
 0x1af   :  { %v895_v53 = vrot.slane %v894_v50, 4  ;;  %v961_v0 = vadd.f32 %v960_v59, %v956_v51 }
 0x1b1   :  { %v896_v56 = vadd.f32 %v895_v53, %v894_v50 }
 0x1b2   :  { %v984_v57 = vpop.xlane.xlu0 %983  ;;  %v920_v58 = vpop.xlane.xlu1 %919 }
 0x1b3   :  { %v897_v60 = vrot.slane %v896_v56, 2  ;;  %v925_v61 = vadd.f32 %v924_v55, %v920_v58  ;;  %v991_v5 = vadd.f32 %v984_v57, %v981_v48 }
 0x1b5   :  { %v926_v1 = vadd.f32 %v925_v61, %v923_v52  ;;  %v898_v4 = vadd.f32 %v897_v60, %v896_v56 }
 0x1b6   :  { %v987_v2 = vpop.xlane.xlu0 %986  ;;  %v959_v3 = vpop.xlane.xlu1 %958 }
 0x1b7   :  { %v927_v6 = vrot.slane %v926_v1, 4  ;;  %v962_v7 = vadd.f32 %v961_v0, %v959_v3  ;;  %v992_v10 = vadd.f32 %v991_v5, %v987_v2  ;;  %v899_v15 = vrot.slane %v898_v4, 1 }
 0x1b9   :  { %v928_v8 = vadd.f32 %v927_v6, %v926_v1  ;;  %v963_v11 = vrot.slane %v962_v7, 4  ;;  %v900_v30 = vadd.f32 %v899_v15, %v898_v4 }
 0x1ba   :  { %v990_v12 = vpop.xlane.xlu1 %989 }
 0x1bb   :  { %v929_v16 = vrot.slane %v928_v8, 2  ;;  %v964_v9 = vadd.f32 %v963_v11, %v962_v7  ;;  %v993_v17 = vadd.f32 %v992_v10, %v990_v12  ;;  %v906_v45 = vmul.f32 %v1029_v38, %v900_v30 }
 0x1bd   :  { %v930_v23 = vadd.f32 %v929_v16, %v928_v8  ;;  %v965_v24 = vrot.slane %v964_v9, 2  ;;  %v994_v28 = vrot.slane %v993_v17, 4 }
 0x1bf   :  { %v931_v32 = vrot.slane %v930_v23, 1  ;;  %v966_v34 = vadd.f32 %v965_v24, %v964_v9  ;;  %v995_v35 = vadd.f32 %v994_v28, %v993_v17 }
 0x1c1   :  { %v932_v41 = vadd.f32 %v931_v32, %v930_v23  ;;  %v967_v42 = vrot.slane %v966_v34, 1  ;;  %v996_v43 = vrot.slane %v995_v35, 2 }
 0x1c3   :  { %v937_v13 = vmul.f32 %v1030_v40, %v932_v41  ;;  %v968_v14 = vadd.f32 %v967_v42, %v966_v34  ;;  %v997_v18 = vadd.f32 %v996_v43, %v995_v35 }
 0x1c5   :  { %v973_v19 = vmul.f32 %v1035_v44, %v968_v14  ;;  %v998_v20 = vrot.slane %v997_v18, 1  ;;  %v938_v21 = vadd.f32 %v937_v13, %v906_v45 }
 0x1c7   :  { %v999_v25 = vadd.f32 %v998_v20, %v997_v18  ;;  %v974_v26 = vadd.f32 %v973_v19, %v938_v21 }
 0x1c9   :  { %v1003_v27 = vmul.f32 %v1036_v22, %v999_v25 }
 0x1cb   :  { %v1004_v31 = vadd.f32 %v1003_v27, %v974_v26 }
 0x1cd   :  { %v1012_v33 = vadd.f32 %v1037_v29, %v1004_v31 }
 0x1cf   :  { %1014 = vst.msk [vmem:[#allocation2] sm:$0x3] %vm1013_vm11, %v1012_v33 }
 0x1d0   :  { %1349 = shalt.err (!%p1346_p4)
}
 0x1d1   :  { %s1350_s8 = scalar_lea.hbm %s1651_s4, 32 }
 0x1d2   :  { %p1351_p5 = scmp.ne.s32.totalorder %s1651_s4, %s1350_s8  ;;  %p1354_p6 = scmp.lt.u32.totalorder %s1350_s8, %s1651_s4 }
 0x1d4   :  { %p1356_p7 = pnand %p1354_p6, %p1351_p5 }
 0x1d6   :  { %1359 = shalt.err (!%p1356_p7)
}
 0x1d7   :  { %1024 = dma.vmem_to_hbm [thread:$0]  %s1022_s1, 32, %s1651_s4, [#allocation3]  }
 0x1d8   :  { %1360 = dma.done.wait [#allocation3], 32  }
 0x1d9   :  { %1361 = vsyncadd [#allocation3], 4294967264 }
 0x1da   :  { %1028 = vsyncpa [#allocation3], 1 }

</bundles_post_ra>
